<compile_context>
chip_gen: v5e
topology: v5e:2x2
jax: 0.10.0
libtpu: 0.0.40
codegen_flags: <defaults>
</compile_context>

<pallas_src>
import functools

import jax
import jax.numpy as jnp
from jax import lax
from jax.experimental import pallas as pl
from jax.experimental.pallas import tpu as pltpu


def _round_up(x, m):
    return (x + m - 1) // m * m


def _pick_vmem_limit():
    """<= 3/4 of physical VMEM, capped at 96 MiB (v7x: 48 MiB, v5e/v6e: 96)."""
    cap = 64 * 1024 * 1024
    try:
        info = pltpu.get_tpu_info()
        cap = int(getattr(info, "vmem_capacity_bytes", cap))
    except Exception:
        pass
    return int(min(cap * 3 // 4, 96 * 1024 * 1024))


def _default_bf16_act():
    """bf16 tanh/elementwise only on chips with bf16 VPU/EUP (v6e, v7x)."""
    try:
        kind = jax.devices()[0].device_kind.lower()
    except Exception:
        return True
    return not any(t in kind for t in ("v2", "v3", "v4", "v5"))


# ----------------------------------------------------------------------------
# Parameter construction (deterministic, PyTorch-style uniform init)
# ----------------------------------------------------------------------------
def _linear_params(key, fan_in, fan_out):
    """PyTorch nn.Linear default init: U(-1/sqrt(fan_in), 1/sqrt(fan_in)).

    Weights kept in PyTorch's native [out, in] layout (the kernel computes
    W @ H with rows on the lane axis); bias stored as [out, 1] so it
    broadcasts along lanes inside the kernel.
    """
    kw, kb = jax.random.split(key)
    bound = 1.0 / jnp.sqrt(jnp.float32(fan_in))
    w = jax.random.uniform(kw, (fan_out, fan_in), jnp.float32, -bound, bound)
    b = jax.random.uniform(kb, (fan_out, 1), jnp.float32, -bound, bound)
    return w, b


def init_blnm_params(key, neurons_per_layer, num_inps_1, num_inps_2,
                     num_outs, disentanglement_level):
    n_layers = len(neurons_per_layer)
    assert 1 <= disentanglement_level <= n_layers

    b1, b2, comb = [], [], []
    inps_1, inps_2 = num_inps_1, num_inps_2
    for index in range(disentanglement_level):
        branch_inps_1 = neurons_per_layer[index] // 2
        branch_inps_2 = neurons_per_layer[index] - branch_inps_1
        key, k1, k2 = jax.random.split(key, 3)
        b1.append(_linear_params(k1, inps_1, branch_inps_1))
        b2.append(_linear_params(k2, inps_2, branch_inps_2))
        inps_1, inps_2 = branch_inps_1, branch_inps_2

    combined_input_size = neurons_per_layer[disentanglement_level - 1]
    for index in range(disentanglement_level, n_layers):
        key, k = jax.random.split(key)
        comb.append(_linear_params(k, combined_input_size,
                                   neurons_per_layer[index]))
        combined_input_size = neurons_per_layer[index]
    key, k = jax.random.split(key)
    comb.append(_linear_params(k, combined_input_size, num_outs))  # final, no tanh
    return b1, b2, comb


# ----------------------------------------------------------------------------
# Pallas kernel
# ----------------------------------------------------------------------------
def _blnm_kernel(n_b1, n_b2, n_comb, chunk, n_chunks, bf16_act,
                 x1_ref, x2_ref, *refs):
    """Inputs arrive [rows, feat]; all hidden activations are [feat, rows]
    (rows on the 128 lanes).  The tile is processed in `chunk`-row sub-chunks.

    refs = [branch1 (w,b)*] + [branch2 (w,b)*]
         + [w_first_a, w_first_b, b_first]            # concat folded into split W
         + [remaining trunk (w,b)*] + [out_ref]
    """
    out_ref = refs[-1]
    prefs = refs[:-1]

    def act(z):
        # jnp.tanh lowers to a single EUP op.  bf16 tanh only where the EUP
        # has a bf16 path (v6e/v7x); on v5e keep f32 and cast afterwards so
        # the next matmul still gets bf16 MXU operands.
        if bf16_act:
            return jnp.tanh(z.astype(jnp.bfloat16))
        return jnp.tanh(z).astype(jnp.bfloat16)

    def chunk_body(c, carry):
        start = c * chunk
        if not isinstance(start, int):
            start = pl.multiple_of(start, chunk)

        # [chunk, feat] blocks, cast to bf16 for the MXU.
        x1 = x1_ref[pl.ds(start, chunk), :].astype(jnp.bfloat16)
        x2 = x2_ref[pl.ds(start, chunk), :].astype(jnp.bfloat16)

        idx = 0

        def branch(x_rows, n_layers, idx):
            h = None
            for layer in range(n_layers):
                w = prefs[idx][...]
                b = prefs[idx + 1][...]
                idx += 2
                if layer == 0:
                    # W[out,in] . X[rows,in]^T  -> [out, rows]; the implicit
                    # row->lane transpose rides the XLU, not a wrapper pass.
                    z = lax.dot_general(
                        w, x_rows, (((1,), (1,)), ((), ())),
                        preferred_element_type=jnp.float32)
                else:
                    z = jnp.dot(w, h, preferred_element_type=jnp.float32)
                h = act(z + b)
            return h, idx

        # Branch 1 / Branch 2: (Linear -> tanh) x disentanglement_level
        h1, idx = branch(x1, n_b1, idx)
        h2, idx = branch(x2, n_b2, idx)

        # First combined layer; torch.cat removed via split weight:
        #   W @ cat(h1, h2) == W[:, :w1] @ h1 + W[:, w1:] @ h2
        wa = prefs[idx][...]
        wb = prefs[idx + 1][...]
        b = prefs[idx + 2][...]
        idx += 3
        h = (jnp.dot(wa, h1, preferred_element_type=jnp.float32)
             + jnp.dot(wb, h2, preferred_element_type=jnp.float32) + b)
        if n_comb > 1:
            h = act(h)

        # Remaining trunk layers; the very last Linear has no activation.
        for i in range(1, n_comb):
            w = prefs[idx][...]
            b = prefs[idx + 1][...]
            idx += 2
            h = jnp.dot(w, h, preferred_element_type=jnp.float32) + b
            if i < n_comb - 1:
                h = act(h)

        out_ref[:, pl.ds(start, chunk)] = h.astype(out_ref.dtype)
        return carry

    if n_chunks == 1:
        chunk_body(0, 0)
    else:
        # Unrolled inner loop: LLO gets full visibility, sub-chunking bounds
        # the live activation set per iteration.
        lax.fori_loop(0, n_chunks, chunk_body, 0, unroll=True)


# ----------------------------------------------------------------------------
# Wrapper
# ----------------------------------------------------------------------------
@functools.partial(jax.jit,
                   static_argnames=("tile_m", "chunk_rows", "bf16_act"))
def blnm_forward(x1, x2, params, *, tile_m=4096, chunk_rows=512,
                 bf16_act=True):
    """x1: [B, S, num_inps_1], x2: [B, S, num_inps_2] -> [B, S, num_outs]."""
    b1p, b2p, combp = params
    B, S, f1 = x1.shape
    f2 = x2.shape[-1]
    num_outs = combp[-1][0].shape[0]
    M = B * S

    chunk = min(chunk_rows, max(tile_m, 128))
    assert chunk % 128 == 0, "chunk_rows must be a multiple of 128"
    tile_m = _round_up(max(tile_m, chunk), chunk)
    tile_m = min(tile_m, _round_up(M, chunk))     # padding waste <= 1 tile
    m_pad = _round_up(M, tile_m)
    n_chunks = tile_m // chunk

    # Free reshape (no transpose / cast pass in HBM); pad rows only if needed.
    x1r = x1.reshape(M, f1)
    x2r = x2.reshape(M, f2)
    if m_pad != M:
        x1r = jnp.pad(x1r, ((0, m_pad - M), (0, 0)))
        x2r = jnp.pad(x2r, ((0, m_pad - M), (0, 0)))

    flat_params = []
    param_specs = []

    def add_param(a, dtype):
        a = a.astype(dtype)
        flat_params.append(a)
        # Full-array block, constant index -> DMA'd once, resident across grid.
        param_specs.append(pl.BlockSpec(a.shape, lambda i: (0, 0)))

    for w, bias in (*b1p, *b2p):
        add_param(w, jnp.bfloat16)        # bf16 MXU operand, resident
        add_param(bias, jnp.float32)
    # Split the first trunk weight so no concatenate is needed in the kernel.
    w0, bias0 = combp[0]
    w1_out = b1p[-1][0].shape[0]
    add_param(w0[:, :w1_out], jnp.bfloat16)
    add_param(w0[:, w1_out:], jnp.bfloat16)
    add_param(bias0, jnp.float32)
    for w, bias in combp[1:]:
        add_param(w, jnp.bfloat16)
        add_param(bias, jnp.float32)

    # Advisory cost estimate so XLA overlaps surrounding reshape/pad ops.
    all_w = [w for w, _ in (*b1p, *b2p, *combp)]
    tanh_w = [w for w, _ in (*b1p, *b2p, *combp[:-1])]
    itemsize = jnp.dtype(x1.dtype).itemsize
    cost = pl.CostEstimate(
        flops=2 * m_pad * sum(w.shape[0] * w.shape[1] for w in all_w),
        transcendentals=m_pad * sum(w.shape[0] for w in tanh_w),
        bytes_accessed=(m_pad * (f1 + f2) * itemsize
                        + m_pad * num_outs * 2
                        + sum(int(p.size) * jnp.dtype(p.dtype).itemsize
                              for p in flat_params)),
    )

    kernel = functools.partial(_blnm_kernel, len(b1p), len(b2p), len(combp),
                               chunk, n_chunks, bf16_act)

    out_t = pl.pallas_call(
        kernel,
        out_shape=jax.ShapeDtypeStruct((num_outs, m_pad), jnp.bfloat16),
        grid=(m_pad // tile_m,),
        in_specs=[
            pl.BlockSpec((tile_m, f1), lambda i: (i, 0)),
            pl.BlockSpec((tile_m, f2), lambda i: (i, 0)),
            *param_specs,
        ],
        out_specs=pl.BlockSpec((num_outs, tile_m), lambda i: (0, i)),
        compiler_params=pltpu.CompilerParams(
            dimension_semantics=("parallel",),      # shards tiles across v7x TCs
            vmem_limit_bytes=_pick_vmem_limit(),
        ),
        cost_estimate=cost,
    )(x1r, x2r, *flat_params)

    # Lane-dense bf16 kernel output; transpose back to [B,S,num_outs] fuses
    # under this jit and moves half the bytes it would in f32.
    out = jnp.transpose(out_t[:, :M]).astype(x1.dtype).reshape(B, S, num_outs)
    return out


# ----------------------------------------------------------------------------
# Pure-JAX reference (mirrors the PyTorch forward) for a sanity check
# ----------------------------------------------------------------------------
def blnm_reference(x1, x2, params, *, bf16_weights=True):
    b1, b2, comb = params

    def q(w):
        # The kernel feeds the MXU bf16 weights; quantize the same way so the
        # comparison isolates activation-precision differences only.
        return w.astype(jnp.bfloat16).astype(jnp.float32) if bf16_weights else w

    h1 = x1
    for w, b in b1:
        h1 = jnp.tanh(h1 @ q(w).T + b[:, 0])
    h2 = x2
    for w, b in b2:
        h2 = jnp.tanh(h2 @ q(w).T + b[:, 0])
    h = jnp.concatenate([h1, h2], axis=2)
    for i, (w, b) in enumerate(comb):
        h = h @ q(w).T + b[:, 0]
        if i < len(comb) - 1:
            h = jnp.tanh(h)
    return h


if __name__ == "__main__":
    # Small architecture consistent with the module's constructor.
    neurons_per_layer = [16, 16, 32]
    num_inps_1 = 3
    num_inps_2 = 2
    num_outs = 4
    disentanglement_level = 2

    B, S = 2, 8  # x1: [B, S, num_inps_1], x2: [B, S, num_inps_2]

    key = jax.random.PRNGKey(0)
    kp, k1, k2 = jax.random.split(key, 3)
    params = init_blnm_params(kp, neurons_per_layer, num_inps_1, num_inps_2,
                              num_outs, disentanglement_level)
    x1 = jax.random.normal(k1, (B, S, num_inps_1), jnp.float32)
    x2 = jax.random.normal(k2, (B, S, num_inps_2), jnp.float32)

    bf16_act = _default_bf16_act()
    out = blnm_forward(x1, x2, params, bf16_act=bf16_act)
    jax.block_until_ready(out)

    ref = blnm_reference(x1, x2, params, bf16_weights=True)

    assert out.shape == (B, S, num_outs)
    err = float(jnp.max(jnp.abs(out - ref)))
    # bf16 activations / tanh / output quantization => loosened tolerance.
    assert jnp.allclose(out, ref, atol=3e-2, rtol=3e-2), f"max abs err {err}"

    print("KERNEL_OK")
</pallas_src>

<mosaic_0001>
module attributes {stable_mosaic.version = 11 : i64} {
  func.func @_blnm_kernel(%arg0: i32, %arg1: memref<512x3xf32, #tpu.memory_space<vmem>>, %arg2: memref<512x2xf32, #tpu.memory_space<vmem>>, %arg3: memref<8x3xbf16, #tpu.memory_space<vmem>>, %arg4: memref<8x1xf32, #tpu.memory_space<vmem>>, %arg5: memref<8x8xbf16, #tpu.memory_space<vmem>>, %arg6: memref<8x1xf32, #tpu.memory_space<vmem>>, %arg7: memref<8x2xbf16, #tpu.memory_space<vmem>>, %arg8: memref<8x1xf32, #tpu.memory_space<vmem>>, %arg9: memref<8x8xbf16, #tpu.memory_space<vmem>>, %arg10: memref<8x1xf32, #tpu.memory_space<vmem>>, %arg11: memref<32x8xbf16, #tpu.memory_space<vmem>>, %arg12: memref<32x8xbf16, #tpu.memory_space<vmem>>, %arg13: memref<32x1xf32, #tpu.memory_space<vmem>>, %arg14: memref<4x32xbf16, #tpu.memory_space<vmem>>, %arg15: memref<4x1xf32, #tpu.memory_space<vmem>>, %arg16: memref<4x512xbf16, #tpu.memory_space<vmem>>) attributes {dimension_semantics = [#tpu.dimension_semantics<parallel>], iteration_bounds = array<i64: 1>, scalar_prefetch = 0 : i64, scratch_operands = 0 : i64, tpu.core_type = #tpu.core_type<tc>, window_params = [{transform_indices = @transform_0, window_bounds = array<i64: 512, 3>}, {transform_indices = @transform_1, window_bounds = array<i64: 512, 2>}, {pipeline_mode = #tpu.pipeline_mode<synchronous>, transform_indices = @transform_2, window_bounds = array<i64: 8, 3>}, {pipeline_mode = #tpu.pipeline_mode<synchronous>, transform_indices = @transform_3, window_bounds = array<i64: 8, 1>}, {pipeline_mode = #tpu.pipeline_mode<synchronous>, transform_indices = @transform_4, window_bounds = array<i64: 8, 8>}, {pipeline_mode = #tpu.pipeline_mode<synchronous>, transform_indices = @transform_5, window_bounds = array<i64: 8, 1>}, {pipeline_mode = #tpu.pipeline_mode<synchronous>, transform_indices = @transform_6, window_bounds = array<i64: 8, 2>}, {pipeline_mode = #tpu.pipeline_mode<synchronous>, transform_indices = @transform_7, window_bounds = array<i64: 8, 1>}, {pipeline_mode = #tpu.pipeline_mode<synchronous>, transform_indices = @transform_8, window_bounds = array<i64: 8, 8>}, {pipeline_mode = #tpu.pipeline_mode<synchronous>, transform_indices = @transform_9, window_bounds = array<i64: 8, 1>}, {pipeline_mode = #tpu.pipeline_mode<synchronous>, transform_indices = @transform_10, window_bounds = array<i64: 32, 8>}, {pipeline_mode = #tpu.pipeline_mode<synchronous>, transform_indices = @transform_11, window_bounds = array<i64: 32, 8>}, {pipeline_mode = #tpu.pipeline_mode<synchronous>, transform_indices = @transform_12, window_bounds = array<i64: 32, 1>}, {pipeline_mode = #tpu.pipeline_mode<synchronous>, transform_indices = @transform_13, window_bounds = array<i64: 4, 32>}, {pipeline_mode = #tpu.pipeline_mode<synchronous>, transform_indices = @transform_14, window_bounds = array<i64: 4, 1>}, {transform_indices = @transform_15, window_bounds = array<i64: 4, 512>}]} {
    %c0 = arith.constant 0 : index
    %c0_0 = arith.constant 0 : index
    %0 = vector.load %arg1[%c0, %c0_0] : memref<512x3xf32, #tpu.memory_space<vmem>>, vector<512x3xf32>
    %1 = arith.truncf %0 : vector<512x3xf32> to vector<512x3xbf16>
    %c0_1 = arith.constant 0 : index
    %c0_2 = arith.constant 0 : index
    %2 = vector.load %arg2[%c0_1, %c0_2] : memref<512x2xf32, #tpu.memory_space<vmem>>, vector<512x2xf32>
    %3 = arith.truncf %2 : vector<512x2xf32> to vector<512x2xbf16>
    %c0_3 = arith.constant 0 : index
    %c0_4 = arith.constant 0 : index
    %4 = vector.load %arg3[%c0_3, %c0_4] : memref<8x3xbf16, #tpu.memory_space<vmem>>, vector<8x3xbf16>
    %c0_5 = arith.constant 0 : index
    %c0_6 = arith.constant 0 : index
    %5 = vector.load %arg4[%c0_5, %c0_6] : memref<8x1xf32, #tpu.memory_space<vmem>>, vector<8x1xf32>
    %cst = arith.constant dense<0.000000e+00> : vector<8x512xf32>
    %6 = tpu.matmul %4, %1, %cst {dimension_numbers = #tpu.dot_dimension_numbers<[1], [1], [0], [0], [0, 0, 1, 0], [], []>} : vector<8x3xbf16>, vector<512x3xbf16>, vector<8x512xf32> -> vector<8x512xf32>
    %7 = vector.broadcast %5 : vector<8x1xf32> to vector<8x512xf32>
    %8 = arith.addf %6, %7 : vector<8x512xf32>
    %9 = arith.truncf %8 : vector<8x512xf32> to vector<8x512xbf16>
    %10 = math.tanh %9 : vector<8x512xbf16>
    %c0_7 = arith.constant 0 : index
    %c0_8 = arith.constant 0 : index
    %11 = vector.load %arg5[%c0_7, %c0_8] : memref<8x8xbf16, #tpu.memory_space<vmem>>, vector<8x8xbf16>
    %c0_9 = arith.constant 0 : index
    %c0_10 = arith.constant 0 : index
    %12 = vector.load %arg6[%c0_9, %c0_10] : memref<8x1xf32, #tpu.memory_space<vmem>>, vector<8x1xf32>
    %cst_11 = arith.constant dense<0.000000e+00> : vector<8x512xf32>
    %13 = tpu.matmul %11, %10, %cst_11 {dimension_numbers = #tpu.dot_dimension_numbers<[1], [0], [0], [1], [0, 0, 1, 1], [], []>} : vector<8x8xbf16>, vector<8x512xbf16>, vector<8x512xf32> -> vector<8x512xf32>
    %14 = vector.broadcast %12 : vector<8x1xf32> to vector<8x512xf32>
    %15 = arith.addf %13, %14 : vector<8x512xf32>
    %16 = arith.truncf %15 : vector<8x512xf32> to vector<8x512xbf16>
    %17 = math.tanh %16 : vector<8x512xbf16>
    %c0_12 = arith.constant 0 : index
    %c0_13 = arith.constant 0 : index
    %18 = vector.load %arg7[%c0_12, %c0_13] : memref<8x2xbf16, #tpu.memory_space<vmem>>, vector<8x2xbf16>
    %c0_14 = arith.constant 0 : index
    %c0_15 = arith.constant 0 : index
    %19 = vector.load %arg8[%c0_14, %c0_15] : memref<8x1xf32, #tpu.memory_space<vmem>>, vector<8x1xf32>
    %cst_16 = arith.constant dense<0.000000e+00> : vector<8x512xf32>
    %20 = tpu.matmul %18, %3, %cst_16 {dimension_numbers = #tpu.dot_dimension_numbers<[1], [1], [0], [0], [0, 0, 1, 0], [], []>} : vector<8x2xbf16>, vector<512x2xbf16>, vector<8x512xf32> -> vector<8x512xf32>
    %21 = vector.broadcast %19 : vector<8x1xf32> to vector<8x512xf32>
    %22 = arith.addf %20, %21 : vector<8x512xf32>
    %23 = arith.truncf %22 : vector<8x512xf32> to vector<8x512xbf16>
    %24 = math.tanh %23 : vector<8x512xbf16>
    %c0_17 = arith.constant 0 : index
    %c0_18 = arith.constant 0 : index
    %25 = vector.load %arg9[%c0_17, %c0_18] : memref<8x8xbf16, #tpu.memory_space<vmem>>, vector<8x8xbf16>
    %c0_19 = arith.constant 0 : index
    %c0_20 = arith.constant 0 : index
    %26 = vector.load %arg10[%c0_19, %c0_20] : memref<8x1xf32, #tpu.memory_space<vmem>>, vector<8x1xf32>
    %cst_21 = arith.constant dense<0.000000e+00> : vector<8x512xf32>
    %27 = tpu.matmul %25, %24, %cst_21 {dimension_numbers = #tpu.dot_dimension_numbers<[1], [0], [0], [1], [0, 0, 1, 1], [], []>} : vector<8x8xbf16>, vector<8x512xbf16>, vector<8x512xf32> -> vector<8x512xf32>
    %28 = vector.broadcast %26 : vector<8x1xf32> to vector<8x512xf32>
    %29 = arith.addf %27, %28 : vector<8x512xf32>
    %30 = arith.truncf %29 : vector<8x512xf32> to vector<8x512xbf16>
    %31 = math.tanh %30 : vector<8x512xbf16>
    %c0_22 = arith.constant 0 : index
    %c0_23 = arith.constant 0 : index
    %32 = vector.load %arg11[%c0_22, %c0_23] : memref<32x8xbf16, #tpu.memory_space<vmem>>, vector<32x8xbf16>
    %c0_24 = arith.constant 0 : index
    %c0_25 = arith.constant 0 : index
    %33 = vector.load %arg12[%c0_24, %c0_25] : memref<32x8xbf16, #tpu.memory_space<vmem>>, vector<32x8xbf16>
    %c0_26 = arith.constant 0 : index
    %c0_27 = arith.constant 0 : index
    %34 = vector.load %arg13[%c0_26, %c0_27] : memref<32x1xf32, #tpu.memory_space<vmem>>, vector<32x1xf32>
    %cst_28 = arith.constant dense<0.000000e+00> : vector<32x512xf32>
    %35 = tpu.matmul %32, %17, %cst_28 {dimension_numbers = #tpu.dot_dimension_numbers<[1], [0], [0], [1], [0, 0, 1, 1], [], []>} : vector<32x8xbf16>, vector<8x512xbf16>, vector<32x512xf32> -> vector<32x512xf32>
    %cst_29 = arith.constant dense<0.000000e+00> : vector<32x512xf32>
    %36 = tpu.matmul %33, %31, %cst_29 {dimension_numbers = #tpu.dot_dimension_numbers<[1], [0], [0], [1], [0, 0, 1, 1], [], []>} : vector<32x8xbf16>, vector<8x512xbf16>, vector<32x512xf32> -> vector<32x512xf32>
    %37 = arith.addf %35, %36 : vector<32x512xf32>
    %38 = vector.broadcast %34 : vector<32x1xf32> to vector<32x512xf32>
    %39 = arith.addf %37, %38 : vector<32x512xf32>
    %40 = arith.truncf %39 : vector<32x512xf32> to vector<32x512xbf16>
    %41 = math.tanh %40 : vector<32x512xbf16>
    %c0_30 = arith.constant 0 : index
    %c0_31 = arith.constant 0 : index
    %42 = vector.load %arg14[%c0_30, %c0_31] : memref<4x32xbf16, #tpu.memory_space<vmem>>, vector<4x32xbf16>
    %c0_32 = arith.constant 0 : index
    %c0_33 = arith.constant 0 : index
    %43 = vector.load %arg15[%c0_32, %c0_33] : memref<4x1xf32, #tpu.memory_space<vmem>>, vector<4x1xf32>
    %cst_34 = arith.constant dense<0.000000e+00> : vector<4x512xf32>
    %44 = tpu.matmul %42, %41, %cst_34 {dimension_numbers = #tpu.dot_dimension_numbers<[1], [0], [0], [1], [0, 0, 1, 1], [], []>} : vector<4x32xbf16>, vector<32x512xbf16>, vector<4x512xf32> -> vector<4x512xf32>
    %45 = vector.broadcast %43 : vector<4x1xf32> to vector<4x512xf32>
    %46 = arith.addf %44, %45 : vector<4x512xf32>
    %47 = arith.truncf %46 : vector<4x512xf32> to vector<4x512xbf16>
    %c0_35 = arith.constant 0 : index
    %c0_36 = arith.constant 0 : index
    %48 = vector.load %arg16[%c0_35, %c0_36] : memref<4x512xbf16, #tpu.memory_space<vmem>>, vector<4x512xbf16>
    tpu.vector_store %arg16[%c0_35, %c0_36], %47 {strides = array<i32>} : memref<4x512xbf16, #tpu.memory_space<vmem>>, vector<4x512xbf16>,
    return
  }
  func.func @transform_0(%arg0: i32) -> (i32, i32) {
    %c0_i32 = arith.constant 0 : i32
    %c0_i32_0 = arith.constant 0 : i32
    return %arg0, %c0_i32 : i32, i32
  }
  func.func @transform_1(%arg0: i32) -> (i32, i32) {
    %c0_i32 = arith.constant 0 : i32
    %c0_i32_0 = arith.constant 0 : i32
    return %arg0, %c0_i32 : i32, i32
  }
  func.func @transform_2(%arg0: i32) -> (i32, i32) {
    %c0_i32 = arith.constant 0 : i32
    %c0_i32_0 = arith.constant 0 : i32
    %c0_i32_1 = arith.constant 0 : i32
    return %c0_i32, %c0_i32_0 : i32, i32
  }
  func.func @transform_3(%arg0: i32) -> (i32, i32) {
    %c0_i32 = arith.constant 0 : i32
    %c0_i32_0 = arith.constant 0 : i32
    %c0_i32_1 = arith.constant 0 : i32
    return %c0_i32, %c0_i32_0 : i32, i32
  }
  func.func @transform_4(%arg0: i32) -> (i32, i32) {
    %c0_i32 = arith.constant 0 : i32
    %c0_i32_0 = arith.constant 0 : i32
    %c0_i32_1 = arith.constant 0 : i32
    return %c0_i32, %c0_i32_0 : i32, i32
  }
  func.func @transform_5(%arg0: i32) -> (i32, i32) {
    %c0_i32 = arith.constant 0 : i32
    %c0_i32_0 = arith.constant 0 : i32
    %c0_i32_1 = arith.constant 0 : i32
    return %c0_i32, %c0_i32_0 : i32, i32
  }
  func.func @transform_6(%arg0: i32) -> (i32, i32) {
    %c0_i32 = arith.constant 0 : i32
    %c0_i32_0 = arith.constant 0 : i32
    %c0_i32_1 = arith.constant 0 : i32
    return %c0_i32, %c0_i32_0 : i32, i32
  }
  func.func @transform_7(%arg0: i32) -> (i32, i32) {
    %c0_i32 = arith.constant 0 : i32
    %c0_i32_0 = arith.constant 0 : i32
    %c0_i32_1 = arith.constant 0 : i32
    return %c0_i32, %c0_i32_0 : i32, i32
  }
  func.func @transform_8(%arg0: i32) -> (i32, i32) {
    %c0_i32 = arith.constant 0 : i32
    %c0_i32_0 = arith.constant 0 : i32
    %c0_i32_1 = arith.constant 0 : i32
    return %c0_i32, %c0_i32_0 : i32, i32
  }
  func.func @transform_9(%arg0: i32) -> (i32, i32) {
    %c0_i32 = arith.constant 0 : i32
    %c0_i32_0 = arith.constant 0 : i32
    %c0_i32_1 = arith.constant 0 : i32
    return %c0_i32, %c0_i32_0 : i32, i32
  }
  func.func @transform_10(%arg0: i32) -> (i32, i32) {
    %c0_i32 = arith.constant 0 : i32
    %c0_i32_0 = arith.constant 0 : i32
    %c0_i32_1 = arith.constant 0 : i32
    return %c0_i32, %c0_i32_0 : i32, i32
  }
  func.func @transform_11(%arg0: i32) -> (i32, i32) {
    %c0_i32 = arith.constant 0 : i32
    %c0_i32_0 = arith.constant 0 : i32
    %c0_i32_1 = arith.constant 0 : i32
    return %c0_i32, %c0_i32_0 : i32, i32
  }
  func.func @transform_12(%arg0: i32) -> (i32, i32) {
    %c0_i32 = arith.constant 0 : i32
    %c0_i32_0 = arith.constant 0 : i32
    %c0_i32_1 = arith.constant 0 : i32
    return %c0_i32, %c0_i32_0 : i32, i32
  }
  func.func @transform_13(%arg0: i32) -> (i32, i32) {
    %c0_i32 = arith.constant 0 : i32
    %c0_i32_0 = arith.constant 0 : i32
    %c0_i32_1 = arith.constant 0 : i32
    return %c0_i32, %c0_i32_0 : i32, i32
  }
  func.func @transform_14(%arg0: i32) -> (i32, i32) {
    %c0_i32 = arith.constant 0 : i32
    %c0_i32_0 = arith.constant 0 : i32
    %c0_i32_1 = arith.constant 0 : i32
    return %c0_i32, %c0_i32_0 : i32, i32
  }
  func.func @transform_15(%arg0: i32) -> (i32, i32) {
    %c0_i32 = arith.constant 0 : i32
    %c0_i32_0 = arith.constant 0 : i32
    return %c0_i32, %arg0 : i32, i32
  }
}

</mosaic_0001>

<bundles_post_ra>
// kernel: blnm_forward.1
= control target key start
LH: loop header
LB: loop body
LE: loop exit
PB: predicated region body
PF: predicated region fallthrough
CT: control target
= control target key end

     0   :  { %vm250_vm0 = vcmask 23552   ;;  %vm517_vm1 = vcmask 15360   ;;  %vm429_vm2 = vcmask 1043456   ;;  %vm425_vm3 = vcmask 64512   ;;  %s1978_s0 = inlined_call_operand.vmem [shape: f32[512,3], index: 0, kind: input, shape index: {}]   ;;  %s1979_s3 = inlined_call_operand.vmem [shape: f32[8,1], index: 3, kind: input, shape index: {}]   ;;  %s1980_s7 = inlined_call_operand.vmem [shape: f32[8,1], index: 7, kind: input, shape index: {}]   ;;  %s1981_s12 = inlined_call_operand.vmem [shape: f32[32,1], index: 12, kind: input, shape index: {}]   ;;  %s1982_s2 = inlined_call_operand.vmem [shape: bf16[8,3], index: 2, kind: input, shape index: {}]   ;;  %s1983_s1 = inlined_call_operand.vmem [shape: f32[512,2], index: 1, kind: input, shape index: {}]   ;;  %s1984_s4 = inlined_call_operand.vmem [shape: bf16[8,8], index: 4, kind: input, shape index: {}]   ;;  %s1985_s9 = inlined_call_operand.vmem [shape: f32[8,1], index: 9, kind: input, shape index: {}]   ;;  %s1986_s5 = inlined_call_operand.vmem [shape: f32[8,1], index: 5, kind: input, shape index: {}]   ;;  %s1987_s6 = inlined_call_operand.vmem [shape: bf16[8,2], index: 6, kind: input, shape index: {}]   ;;  %s1988_s8 = inlined_call_operand.vmem [shape: bf16[8,8], index: 8, kind: input, shape index: {}]   ;;  %s1989_s11 = inlined_call_operand.vmem [shape: bf16[32,8], index: 11, kind: input, shape index: {}]   ;;  %s1990_s10 = inlined_call_operand.vmem [shape: bf16[32,8], index: 10, kind: input, shape index: {}]   ;;  %s1991_s14 = inlined_call_operand.vmem [shape: f32[4,1], index: 14, kind: input, shape index: {}]   ;;  %s1992_s13 = inlined_call_operand.vmem [shape: bf16[4,32], index: 13, kind: input, shape index: {}]   ;;  %s1993_s15 = inlined_call_operand.vmem [shape: bf16[4,512], index: 15, kind: output, shape index: {}]  }
   0x1   :  { %v65_v0 = vld [vmem:[%s1978_s0 + $0x70] sm:$0xff]  ;;  %v66_v1 = vld [vmem:[%s1978_s0 + $0x78] sm:$0xff]  ;;  %v63_v11 = vld [vmem:[%s1978_s0 + $0x60] sm:$0xff]  ;;  %vm1086_vm4 = vcmask 261120   ;;  %vm1149_vm5 = vcmask 1041408   ;;  %vm1153_vm6 = vcmask 1045508  }
   0x2   :  { %v81_v2 = vld [vmem:[%s1978_s0 + $0xf0] sm:$0xff]  ;;  %v122_v3 = vpack.c.bf16 %v66_v1, %v65_v0  ;;  %v82_v4 = vld [vmem:[%s1978_s0 + $0xf8] sm:$0xff]  ;;  %v64_v14 = vld [vmem:[%s1978_s0 + $0x68] sm:$0xff] }
   0x3   :  { %v97_v5 = vld [vmem:[%s1978_s0 + $0x170] sm:$0xff]  ;;  %v98_v6 = vld [vmem:[%s1978_s0 + $0x178] sm:$0xff]  ;;  %v130_v7 = vpack.c.bf16 %v82_v4, %v81_v2  ;;  %v79_v15 = vld [vmem:[%s1978_s0 + $0xe0] sm:$0xff]  ;;  %v121_v23 = vpack.c.bf16 %v64_v14, %v63_v11 }
   0x4   :  { %v138_v8 = vpack.c.bf16 %v98_v6, %v97_v5  ;;  %v113_v9 = vld [vmem:[%s1978_s0 + $0x1f0] sm:$0xff]  ;;  %v114_v10 = vld [vmem:[%s1978_s0 + $0x1f8] sm:$0xff]  ;;  %v276_v12 = vsel %vm250_vm0, %v122_v3, 0  ;;  %v80_v16 = vld [vmem:[%s1978_s0 + $0xe8] sm:$0xff] }
   0x5   :  { %v146_v13 = vpack.c.bf16 %v114_v10, %v113_v9  ;;  %350 = vmatpush.bf16.xpose.msra.mxu0 %v276_v12  ;;  %v300_v17 = vsel %vm250_vm0, %v130_v7, 0  ;;  %v95_v19 = vld [vmem:[%s1978_s0 + $0x160] sm:$0xff]  ;;  %v96_v20 = vld [vmem:[%s1978_s0 + $0x168] sm:$0xff]  ;;  %v129_v25 = vpack.c.bf16 %v80_v16, %v79_v15  ;;  %v273_v28 = vsel %vm250_vm0, %v121_v23, 0  ;;  %v61_v31 = vld [vmem:[%s1978_s0 + $0x50] sm:$0xff] }
   0x6   :  { %v324_v18 = vsel %vm250_vm0, %v138_v8, 0  ;;  %v111_v21 = vld [vmem:[%s1978_s0 + $0x1e0] sm:$0xff]  ;;  %363 = vmatpush.bf16.xpose.msra.mxu1 %v300_v17  ;;  %v112_v24 = vld [vmem:[%s1978_s0 + $0x1e8] sm:$0xff]  ;;  %v137_v26 = vpack.c.bf16 %v96_v20, %v95_v19  ;;  %v62_v32 = vld [vmem:[%s1978_s0 + $0x58] sm:$0xff]  ;;  %v1288_v12 = vmov 0  }
   0x7   :  { %376 = vmatpush.bf16.xpose.msra.mxu2 %v324_v18  ;;  %v348_v22 = vsel %vm250_vm0, %v146_v13, 0  ;;  %v145_v27 = vpack.c.bf16 %v112_v24, %v111_v21  ;;  %v297_v29 = vsel %vm250_vm0, %v129_v25, 0  ;;  %v77_v33 = vld [vmem:[%s1978_s0 + $0xd0] sm:$0xff]  ;;  %v78_v35 = vld [vmem:[%s1978_s0 + $0xd8] sm:$0xff]  ;;  %v120_v40 = vpack.c.bf16 %v62_v32, %v61_v31  ;;  %v59_v47 = vld [vmem:[%s1978_s0 + $0x40] sm:$0xff]  ;;  %1221 = vset.pattern.permute.xlu0 %v1288_v12 }
   0x8   :  { %389 = vmatpush.bf16.xpose.msra.mxu3 %v348_v22  ;;  %v321_v30 = vsel %vm250_vm0, %v137_v26, 0  ;;  %v93_v36 = vld [vmem:[%s1978_s0 + $0x150] sm:$0xff]  ;;  %v94_v37 = vld [vmem:[%s1978_s0 + $0x158] sm:$0xff]  ;;  %v128_v41 = vpack.c.bf16 %v78_v35, %v77_v33  ;;  %v60_v48 = vld [vmem:[%s1978_s0 + $0x48] sm:$0xff]  ;;  %1222 = vset.pattern.permute.xlu1 %v1288_v12 }
   0x9   :  { %v345_v34 = vsel %vm250_vm0, %v145_v27, 0  ;;  %v109_v38 = vld [vmem:[%s1978_s0 + $0x1d0] sm:$0xff]  ;;  %v110_v39 = vld [vmem:[%s1978_s0 + $0x1d8] sm:$0xff]  ;;  %v136_v42 = vpack.c.bf16 %v94_v37, %v93_v36  ;;  %v270_v44 = vsel %vm250_vm0, %v120_v40, 0  ;;  %v75_v49 = vld [vmem:[%s1978_s0 + $0xc0] sm:$0xff]  ;;  %v119_v56 = vpack.c.bf16 %v60_v48, %v59_v47  ;;  %1223 = vset.pattern.permute.xlu2 %v1288_v12 }
   0xa   :  { %v144_v43 = vpack.c.bf16 %v110_v39, %v109_v38  ;;  %v294_v45 = vsel %vm250_vm0, %v128_v41, 0  ;;  %v76_v51 = vld [vmem:[%s1978_s0 + $0xc8] sm:$0xff]  ;;  %v91_v52 = vld [vmem:[%s1978_s0 + $0x140] sm:$0xff]  ;;  %v57_v63 = vld [vmem:[%s1978_s0 + $0x30] sm:$0xff] }
   0xb   :  { %v318_v46 = vsel %vm250_vm0, %v136_v42, 0  ;;  %v92_v53 = vld [vmem:[%s1978_s0 + $0x148] sm:$0xff]  ;;  %v107_v54 = vld [vmem:[%s1978_s0 + $0x1c0] sm:$0xff]  ;;  %v127_v57 = vpack.c.bf16 %v76_v51, %v75_v49  ;;  %v267_v60 = vsel %vm250_vm0, %v119_v56, 0  ;;  %v58_v0 = vld [vmem:[%s1978_s0 + $0x38] sm:$0xff] }
   0xc   :  { %v342_v50 = vsel %vm250_vm0, %v144_v43, 0  ;;  %v108_v55 = vld [vmem:[%s1978_s0 + $0x1c8] sm:$0xff]  ;;  %v135_v58 = vpack.c.bf16 %v92_v53, %v91_v52  ;;  %v73_v1 = vld [vmem:[%s1978_s0 + $0xb0] sm:$0xff]  ;;  %v74_v3 = vld [vmem:[%s1978_s0 + $0xb8] sm:$0xff]  ;;  %v118_v8 = vpack.c.bf16 %v58_v0, %v57_v63 }
   0xd   :  { %351 = vmatpush.bf16.xpose.msra.mxu0 %v273_v28  ;;  %v143_v59 = vpack.c.bf16 %v108_v55, %v107_v54  ;;  %v291_v61 = vsel %vm250_vm0, %v127_v57, 0  ;;  %v89_v4 = vld [vmem:[%s1978_s0 + $0x130] sm:$0xff]  ;;  %v90_v5 = vld [vmem:[%s1978_s0 + $0x138] sm:$0xff]  ;;  %v126_v9 = vpack.c.bf16 %v74_v3, %v73_v1  ;;  %v55_v16 = vld [vmem:[%s1978_s0 + $0x20] sm:$0xff] }
   0xe   :  { %364 = vmatpush.bf16.xpose.msra.mxu1 %v297_v29  ;;  %v315_v62 = vsel %vm250_vm0, %v135_v58, 0  ;;  %v105_v6 = vld [vmem:[%s1978_s0 + $0x1b0] sm:$0xff]  ;;  %v106_v7 = vld [vmem:[%s1978_s0 + $0x1b8] sm:$0xff]  ;;  %v134_v10 = vpack.c.bf16 %v90_v5, %v89_v4  ;;  %v264_v13 = vsel %vm250_vm0, %v118_v8, 0  ;;  %v56_v17 = vld [vmem:[%s1978_s0 + $0x28] sm:$0xff] }
   0xf   :  { %377 = vmatpush.bf16.xpose.msra.mxu2 %v321_v30  ;;  %v339_v2 = vsel %vm250_vm0, %v143_v59, 0  ;;  %v142_v11 = vpack.c.bf16 %v106_v7, %v105_v6  ;;  %v288_v14 = vsel %vm250_vm0, %v126_v9, 0  ;;  %v71_v18 = vld [vmem:[%s1978_s0 + $0xa0] sm:$0xff]  ;;  %v72_v20 = vld [vmem:[%s1978_s0 + $0xa8] sm:$0xff]  ;;  %v117_v25 = vpack.c.bf16 %v56_v17, %v55_v16  ;;  %v53_v31 = vld [vmem:[%s1978_s0 + $0x10] sm:$0xff] }
  0x10   :  { %390 = vmatpush.bf16.xpose.msra.mxu3 %v345_v34  ;;  %v312_v15 = vsel %vm250_vm0, %v134_v10, 0  ;;  %v87_v21 = vld [vmem:[%s1978_s0 + $0x120] sm:$0xff]  ;;  %v88_v22 = vld [vmem:[%s1978_s0 + $0x128] sm:$0xff]  ;;  %v125_v27 = vpack.c.bf16 %v72_v20, %v71_v18  ;;  %v54_v34 = vld [vmem:[%s1978_s0 + $0x18] sm:$0xff] }
  0x11   :  { %v336_v19 = vsel %vm250_vm0, %v142_v11, 0  ;;  %v103_v23 = vld [vmem:[%s1978_s0 + $0x1a0] sm:$0xff]  ;;  %v104_v24 = vld [vmem:[%s1978_s0 + $0x1a8] sm:$0xff]  ;;  %v133_v28 = vpack.c.bf16 %v88_v22, %v87_v21  ;;  %v261_v30 = vsel %vm250_vm0, %v117_v25, 0  ;;  %v69_v35 = vld [vmem:[%s1978_s0 + $0x90] sm:$0xff]  ;;  %v116_v43 = vpack.c.bf16 %v54_v34, %v53_v31 }
  0x12   :  { %v244_v26 = vld [vmem:[%s1979_s3] sm:$0xff]  ;;  %v141_v29 = vpack.c.bf16 %v104_v24, %v103_v23  ;;  %v285_v32 = vsel %vm250_vm0, %v125_v27, 0  ;;  %v70_v36 = vld [vmem:[%s1978_s0 + $0x98] sm:$0xff]  ;;  %v85_v38 = vld [vmem:[%s1978_s0 + $0x110] sm:$0xff] }
  0x13   :  { %247 = vperm.xlu0 %1221, %v244_v26   ;;  %v309_v33 = vsel %vm250_vm0, %v133_v28, 0  ;;  %v86_v39 = vld [vmem:[%s1978_s0 + $0x118] sm:$0xff]  ;;  %v511_v40 = vld [vmem:[%s1980_s7] sm:$0xff]  ;;  %v101_v41 = vld [vmem:[%s1978_s0 + $0x190] sm:$0xff]  ;;  %v258_v47 = vsel %vm250_vm0, %v116_v43, 0 }
  0x14   :  { %v333_v37 = vsel %vm250_vm0, %v141_v29, 0  ;;  %v102_v42 = vld [vmem:[%s1978_s0 + $0x198] sm:$0xff]  ;;  %v51_v48 = vld [vmem:[%s1978_s0] sm:$0xff]  ;;  %v52_v51 = vld [vmem:[%s1978_s0 + $0x8] sm:$0xff] }
  0x15   :  { %352 = vmatpush.bf16.xpose.msra.mxu0 %v270_v44  ;;  %v124_v44 = vpack.c.bf16 %v70_v36, %v69_v35  ;;  %v67_v52 = vld [vmem:[%s1978_s0 + $0x80] sm:$0xff]  ;;  %v68_v53 = vld [vmem:[%s1978_s0 + $0x88] sm:$0xff]  ;;  %v161_v17 = vld [vmem:[%s1983_s1 + $0x70] sm:$0xff] }
  0x16   :  { %365 = vmatpush.bf16.xpose.msra.mxu1 %v294_v45  ;;  %v132_v45 = vpack.c.bf16 %v86_v39, %v85_v38  ;;  %v83_v55 = vld [vmem:[%s1978_s0 + $0x100] sm:$0xff]  ;;  %v84_v56 = vld [vmem:[%s1978_s0 + $0x108] sm:$0xff]  ;;  %v162_v18 = vld [vmem:[%s1983_s1 + $0x78] sm:$0xff] }
  0x17   :  { %378 = vmatpush.bf16.xpose.msra.mxu2 %v318_v46  ;;  %v140_v46 = vpack.c.bf16 %v102_v42, %v101_v41  ;;  %v282_v49 = vsel %vm250_vm0, %v124_v44, 0  ;;  %v783_v57 = vld [vmem:[%s1981_s12] sm:$0xff]  ;;  %v100_v59 = vld [vmem:[%s1978_s0 + $0x188] sm:$0xff]  ;;  %v177_v21 = vld [vmem:[%s1983_s1 + $0xf0] sm:$0xff]  ;;  %v218_v26 = vpack.c.bf16 %v162_v18, %v161_v17 }
  0x18   :  { %391 = vmatpush.bf16.xpose.msra.mxu3 %v342_v50  ;;  %v306_v50 = vsel %vm250_vm0, %v132_v45, 0  ;;  %v99_v58 = vld [vmem:[%s1978_s0 + $0x180] sm:$0xff]  ;;  %v178_v22 = vld [vmem:[%s1983_s1 + $0xf8] sm:$0xff]  ;;  %v193_v36 = vld [vmem:[%s1983_s1 + $0x170] sm:$0xff] }
  0x19   :  { %v330_v54 = vsel %vm250_vm0, %v140_v46, 0  ;;  %v139_v63 = vpack.c.bf16 %v100_v59, %v99_v58  ;;  %v243_v4 = vld [vmem:[%s1982_s2] sm:$0xf]  ;;  %v226_v28 = vpack.c.bf16 %v178_v22, %v177_v21  ;;  %v543_v35 = vsel %vm517_vm1, %v218_v26, 0  ;;  %v209_v38 = vld [vmem:[%s1983_s1 + $0x1f0] sm:$0xff]  ;;  %v210_v42 = vld [vmem:[%s1983_s1 + $0x1f8] sm:$0xff] }
  0x1a   :  { %v159_v43 = vld [vmem:[%s1983_s1 + $0x60] sm:$0xff]  ;;  %v160_v44 = vld [vmem:[%s1983_s1 + $0x68] sm:$0xff]  ;;  %v206_v18 = vld [vmem:[%s1983_s1 + $0x1d8] sm:$0xff] }
  0x1b   :  { %514 = vperm.xlu0 %1221, %v511_v40   ;;  %v327_v3 = vsel %vm250_vm0, %v139_v63, 0  ;;  %v567_v41 = vsel %vm517_vm1, %v226_v28, 0  ;;  %v175_v46 = vld [vmem:[%s1983_s1 + $0xe0] sm:$0xff]  ;;  %v172_v22 = vld [vmem:[%s1983_s1 + $0xc8] sm:$0xff] }
  0x1c   :  { %v171_v21 = vld [vmem:[%s1983_s1 + $0xc0] sm:$0xff] }
  0x1d   :  { %353 = vmatpush.bf16.xpose.msra.mxu0 %v267_v60  ;;  %v115_v60 = vpack.c.bf16 %v52_v51, %v51_v48  ;;  %v223_v26 = vpack.c.bf16 %v172_v22, %v171_v21  ;;  %v147_v21 = vld [vmem:[%s1983_s1] sm:$0xff]  ;;  %v148_v22 = vld [vmem:[%s1983_s1 + $0x8] sm:$0xff] }
  0x1e   :  { %366 = vmatpush.bf16.xpose.msra.mxu1 %v291_v61  ;;  %v123_v61 = vpack.c.bf16 %v68_v53, %v67_v52 }
  0x1f   :  { %379 = vmatpush.bf16.xpose.msra.mxu2 %v315_v62  ;;  %v131_v62 = vpack.c.bf16 %v84_v56, %v83_v55  ;;  %v255_v0 = vsel %vm250_vm0, %v115_v60, 0  ;;  %v191_v60 = vld [vmem:[%s1983_s1 + $0x160] sm:$0xff] }
  0x20   :  { %392 = vmatpush.bf16.xpose.msra.mxu3 %v339_v2  ;;  %v279_v1 = vsel %vm250_vm0, %v123_v61, 0  ;;  %v192_v61 = vld [vmem:[%s1983_s1 + $0x168] sm:$0xff] }
  0x21   :  { %v303_v2 = vsel %vm250_vm0, %v131_v62, 0  ;;  %v207_v62 = vld [vmem:[%s1983_s1 + $0x1e0] sm:$0xff] }
  0x23   :  { %997 = vperm.xlu0 %1221, %v783_v57  }
  0x25   :  { %354 = vmatpush.bf16.xpose.msra.mxu0 %v264_v13 }
  0x26   :  { %367 = vmatpush.bf16.xpose.msra.mxu1 %v288_v14 }
  0x27   :  { %380 = vmatpush.bf16.xpose.msra.mxu2 %v312_v15 }
  0x28   :  { %393 = vmatpush.bf16.xpose.msra.mxu3 %v336_v19 }
  0x2d   :  { %355 = vmatpush.bf16.xpose.msra.mxu0 %v261_v30 }
  0x2e   :  { %368 = vmatpush.bf16.xpose.msra.mxu1 %v285_v32 }
  0x2f   :  { %381 = vmatpush.bf16.xpose.msra.mxu2 %v309_v33 }
  0x30   :  { %394 = vmatpush.bf16.xpose.msra.mxu3 %v333_v37  ;;  %v194_v37 = vld [vmem:[%s1983_s1 + $0x178] sm:$0xff] }
  0x31   :  { %v234_v48 = vpack.c.bf16 %v194_v37, %v193_v36  ;;  %v154_v36 = vld [vmem:[%s1983_s1 + $0x38] sm:$0xff]  ;;  %v169_v37 = vld [vmem:[%s1983_s1 + $0xb0] sm:$0xff] }
  0x33   :  { %v591_v56 = vsel %vm517_vm1, %v234_v48, 0  ;;  %v186_v48 = vld [vmem:[%s1983_s1 + $0x138] sm:$0xff] }
  0x35   :  { %356 = vmatpush.bf16.xpose.msra.mxu0 %v258_v47  ;;  %v176_v47 = vld [vmem:[%s1983_s1 + $0xe8] sm:$0xff] }
  0x36   :  { %369 = vmatpush.bf16.xpose.msra.mxu1 %v282_v49  ;;  %v242_v49 = vpack.c.bf16 %v210_v42, %v209_v38  ;;  %v225_v52 = vpack.c.bf16 %v176_v47, %v175_v46  ;;  %v170_v38 = vld [vmem:[%s1983_s1 + $0xb8] sm:$0xff]  ;;  %v686_v42 = vld [vmem:[%s1985_s9] sm:$0xff]  ;;  %v185_v47 = vld [vmem:[%s1983_s1 + $0x130] sm:$0xff] }
  0x37   :  { %382 = vmatpush.bf16.xpose.msra.mxu2 %v306_v50  ;;  %v217_v50 = vpack.c.bf16 %v160_v44, %v159_v43  ;;  %v222_v43 = vpack.c.bf16 %v170_v38, %v169_v37  ;;  %689 = vperm.xlu1 %1222, %v686_v42  }
  0x38   :  { %395 = vmatpush.bf16.xpose.msra.mxu3 %v330_v54  ;;  %v615_v58 = vsel %vm517_vm1, %v242_v49, 0  ;;  %v201_v49 = vld [vmem:[%s1983_s1 + $0x1b0] sm:$0xff] }
  0x39   :  { %v540_v59 = vsel %vm517_vm1, %v217_v50, 0  ;;  %v555_v50 = vsel %vm517_vm1, %v222_v43, 0 }
  0x3d   :  { %357 = vmatpush.bf16.xpose.msra.mxu0 %v255_v0  ;;  %v564_v0 = vsel %vm517_vm1, %v225_v52, 0  ;;  %v151_v52 = vld [vmem:[%s1983_s1 + $0x20] sm:$0xff] }
  0x3e   :  { %370 = vmatpush.bf16.xpose.msra.mxu1 %v279_v1  ;;  %v208_v1 = vld [vmem:[%s1983_s1 + $0x1e8] sm:$0xff] }
  0x3f   :  { %383 = vmatpush.bf16.xpose.msra.mxu2 %v303_v2  ;;  %v157_v2 = vld [vmem:[%s1983_s1 + $0x50] sm:$0xff] }
  0x40   :  { %396 = vmatpush.bf16.xpose.msra.mxu3 %v327_v3  ;;  %v158_v3 = vld [vmem:[%s1983_s1 + $0x58] sm:$0xff] }
  0x44   :  { %1164 = vmatmul.msk.bf16.vlgmr.msra.gmra.mxu0 %vm250_vm0, %v243_v4 }
  0x45   :  { %1165 = vmatmul.msk.bf16.vlgmr.msra.gmra.mxu1 %vm250_vm0, %v243_v4 }
  0x46   :  { %1166 = vmatmul.msk.bf16.vlgmr.msra.gmra.mxu2 %vm250_vm0, %v243_v4 }
  0x47   :  { %1167 = vmatmul.msk.bf16.vlgmr.msra.gmra.mxu3 %vm250_vm0, %v243_v4  ;;  %v173_v4 = vld [vmem:[%s1983_s1 + $0xd0] sm:$0xff] }
  0x85   :  { %v248_v5 = vpop.permute.xlu0 %247 }
  0xc1   :  { %v359_v6 = vpop.f32.mrf.mxu0 }
  0xc2   :  { %v360_v7 = vadd.f32 %v359_v6, %v248_v5  ;;  %v372_v8 = vpop.f32.mrf.mxu1  ;;  %v233_v6 = vpack.c.bf16 %v192_v61, %v191_v60 }
  0xc3   :  { %v373_v9 = vadd.f32 %v372_v8, %v248_v5  ;;  %v216_v8 = vpack.c.bf16 %v158_v3, %v157_v2  ;;  %v200_v3 = vld [vmem:[%s1983_s1 + $0x1a8] sm:$0xff] }
  0xc4   :  { %v402_v10 = vpack.c.bf16 %v360_v7, %v360_v7  ;;  %v241_v7 = vpack.c.bf16 %v208_v1, %v207_v62  ;;  %v199_v1 = vld [vmem:[%s1983_s1 + $0x1a0] sm:$0xff] }
  0xc5   :  { %v403_v11 = vpack.c.bf16 %v373_v9, %v373_v9  ;;  %v418_v9 = vld [vmem:[%s1984_s4] sm:$0xf] }
  0xc6   :  { %v406_v12 = vunpack.c.l.bf16 %v402_v10 }
  0xc7   :  { %v407_v13 = vunpack.c.l.bf16 %v403_v11  ;;  %v588_v11 = vsel %vm517_vm1, %v233_v6, 0  ;;  %v165_v6 = vld [vmem:[%s1983_s1 + $0x90] sm:$0xff] }
  0xc8   :  { %1224 = vtanh.f32 %v406_v12  ;;  %v612_v12 = vsel %vm517_vm1, %v241_v7, 0  ;;  %v166_v7 = vld [vmem:[%s1983_s1 + $0x98] sm:$0xff] }
  0xc9   :  { %v385_v14 = vpop.f32.mrf.mxu2  ;;  %1226 = vtanh.f32 %v407_v13  ;;  %v361_v19 = vpop.f32.mrf.mxu0  ;;  %v537_v13 = vsel %vm517_vm1, %v216_v8, 0  ;;  %v419_v8 = vld [vmem:[%s1986_s5] sm:$0xff] }
  0xca   :  { %v386_v15 = vadd.f32 %v385_v14, %v248_v5  ;;  %v398_v16 = vpop.f32.mrf.mxu3  ;;  %v374_v23 = vpop.f32.mrf.mxu1  ;;  %v189_v14 = vld [vmem:[%s1983_s1 + $0x150] sm:$0xff]  ;;  %v155_v19 = vld [vmem:[%s1983_s1 + $0x40] sm:$0xff]  ;;  %422 = vperm.xlu1 %1222, %v419_v8  }
  0xcb   :  { %v399_v20 = vadd.f32 %v398_v16, %v248_v5  ;;  %v174_v5 = vld [vmem:[%s1983_s1 + $0xd8] sm:$0xff]  ;;  %v205_v16 = vld [vmem:[%s1983_s1 + $0x1d0] sm:$0xff] }
  0xcc   :  { %v404_v24 = vpack.c.bf16 %v386_v15, %v386_v15  ;;  %v224_v10 = vpack.c.bf16 %v174_v5, %v173_v4  ;;  %v190_v15 = vld [vmem:[%s1983_s1 + $0x158] sm:$0xff]  ;;  %v149_v4 = vld [vmem:[%s1983_s1 + $0x10] sm:$0xff] }
  0xcd   :  { %v405_v25 = vpack.c.bf16 %v399_v20, %v399_v20  ;;  %v156_v20 = vld [vmem:[%s1983_s1 + $0x48] sm:$0xff]  ;;  %v232_v23 = vpack.c.bf16 %v190_v15, %v189_v14  ;;  %v150_v5 = vld [vmem:[%s1983_s1 + $0x18] sm:$0xff] }
  0xce   :  { %v408_v27 = vunpack.c.l.bf16 %v404_v24  ;;  %v1225_v29 = vpop.eup %1224  ;;  %v561_v17 = vsel %vm517_vm1, %v224_v10, 0  ;;  %v240_v24 = vpack.c.bf16 %v206_v18, %v205_v16  ;;  %v237_v10 = vpack.c.bf16 %v200_v3, %v199_v1  ;;  %v181_v16 = vld [vmem:[%s1983_s1 + $0x110] sm:$0xff] }
  0xcf   :  { %v409_v30 = vunpack.c.l.bf16 %v405_v25  ;;  %v1227_v31 = vpop.eup %1226  ;;  %v414_v32 = vpack.c.bf16 %v1225_v29, %v1225_v29  ;;  %v215_v25 = vpack.c.bf16 %v156_v20, %v155_v19  ;;  %v197_v18 = vld [vmem:[%s1983_s1 + $0x190] sm:$0xff]  ;;  %v198_v20 = vld [vmem:[%s1983_s1 + $0x198] sm:$0xff] }
  0xd0   :  { %1228 = vtanh.f32 %v408_v27  ;;  %v415_v34 = vpack.c.bf16 %v1227_v31, %v1227_v31  ;;  %v585_v27 = vsel %vm517_vm1, %v232_v23, 0  ;;  %v609_v28 = vsel %vm517_vm1, %v240_v24, 0  ;;  %v188_v31 = vld [vmem:[%s1983_s1 + $0x148] sm:$0xff]  ;;  %v163_v23 = vld [vmem:[%s1983_s1 + $0x80] sm:$0xff] }
  0xd1   :  { %1230 = vtanh.f32 %v409_v30  ;;  %v387_v33 = vpop.f32.mrf.mxu2  ;;  %v431_v40 = vsel %vm429_vm2, %v414_v32, 0  ;;  %v534_v29 = vsel %vm517_vm1, %v215_v25, 0  ;;  %v187_v30 = vld [vmem:[%s1983_s1 + $0x140] sm:$0xff]  ;;  %v600_v14 = vsel %vm517_vm1, %v237_v10, 0  ;;  %v164_v24 = vld [vmem:[%s1983_s1 + $0x88] sm:$0xff] }
  0xd2   :  { %v400_v39 = vpop.f32.mrf.mxu3  ;;  %449 = vmatpush.bf16.msrb.mxu0 %v431_v40  ;;  %v434_v45 = vsel %vm429_vm2, %v415_v34, 0  ;;  %v203_v32 = vld [vmem:[%s1983_s1 + $0x1c0] sm:$0xff]  ;;  %v558_v33 = vsel %vm517_vm1, %v223_v26, 0  ;;  %v204_v34 = vld [vmem:[%s1983_s1 + $0x1c8] sm:$0xff]  ;;  %v236_v26 = vpack.c.bf16 %v198_v20, %v197_v18 }
  0xd3   :  { %462 = vmatpush.bf16.msrb.mxu1 %v434_v45  ;;  %v231_v39 = vpack.c.bf16 %v188_v31, %v187_v30  ;;  %v239_v40 = vpack.c.bf16 %v204_v34, %v203_v32  ;;  %v179_v32 = vld [vmem:[%s1983_s1 + $0x100] sm:$0xff] }
  0xd4   :  { %v597_v30 = vsel %vm517_vm1, %v236_v26, 0  ;;  %v685_v10 = vld [vmem:[%s1988_s8] sm:$0xf] }
  0xd5   :  { %1168 = vmatmul.msk.bf16.vlgmr.msrb.gmra.mxu0 %vm425_vm3, %v418_v9  ;;  %v582_v44 = vsel %vm517_vm1, %v231_v39, 0  ;;  %v606_v45 = vsel %vm517_vm1, %v239_v40, 0  ;;  %v510_v40 = vld [vmem:[%s1987_s6] sm:$0xf] }
  0xd6   :  { %617 = vmatpush.bf16.xpose.msra.mxu0 %v543_v35  ;;  %v1229_v51 = vpop.eup %1228  ;;  %1169 = vmatmul.msk.bf16.vlgmr.msrb.gmra.mxu1 %vm425_vm3, %v418_v9  ;;  %v153_v35 = vld [vmem:[%s1983_s1 + $0x30] sm:$0xff] }
  0xd7   :  { %630 = vmatpush.bf16.xpose.msra.mxu1 %v567_v41  ;;  %v1231_v53 = vpop.eup %1230  ;;  %v416_v54 = vpack.c.bf16 %v1229_v51, %v1229_v51  ;;  %v214_v41 = vpack.c.bf16 %v154_v36, %v153_v35  ;;  %v202_v51 = vld [vmem:[%s1983_s1 + $0x1b8] sm:$0xff]  ;;  %v195_v35 = vld [vmem:[%s1983_s1 + $0x180] sm:$0xff]  ;;  %v196_v36 = vld [vmem:[%s1983_s1 + $0x188] sm:$0xff] }
  0xd8   :  { %v417_v55 = vpack.c.bf16 %v1231_v53, %v1231_v53  ;;  %v152_v53 = vld [vmem:[%s1983_s1 + $0x28] sm:$0xff]  ;;  %v235_v38 = vpack.c.bf16 %v196_v36, %v195_v35 }
  0xd9   :  { %v437_v57 = vsel %vm429_vm2, %v416_v54, 0  ;;  %v531_v46 = vsel %vm517_vm1, %v214_v41, 0  ;;  %v167_v54 = vld [vmem:[%s1983_s1 + $0xa0] sm:$0xff] }
  0xda   :  { %475 = vmatpush.bf16.msrb.mxu2 %v437_v57  ;;  %v440_v63 = vsel %vm429_vm2, %v417_v55, 0  ;;  %v168_v55 = vld [vmem:[%s1983_s1 + $0xa8] sm:$0xff]  ;;  %v238_v57 = vpack.c.bf16 %v202_v51, %v201_v49  ;;  %v594_v41 = vsel %vm517_vm1, %v235_v38, 0 }
  0xdb   :  { %488 = vmatpush.bf16.msrb.mxu3 %v440_v63  ;;  %v183_v63 = vld [vmem:[%s1983_s1 + $0x120] sm:$0xff] }
  0xdc   :  { %v603_v61 = vsel %vm517_vm1, %v238_v57, 0 }
  0xdd   :  { %1170 = vmatmul.msk.bf16.vlgmr.msrb.gmra.mxu2 %vm425_vm3, %v418_v9 }
  0xde   :  { %643 = vmatpush.bf16.xpose.msra.mxu2 %v591_v56  ;;  %618 = vmatpush.bf16.xpose.msra.mxu0 %v540_v59  ;;  %v230_v56 = vpack.c.bf16 %v186_v48, %v185_v47  ;;  %v221_v59 = vpack.c.bf16 %v168_v55, %v167_v54  ;;  %v784_v55 = vld [vmem:[%s1981_s12 + $0x8] sm:$0xff] }
  0xdf   :  { %656 = vmatpush.bf16.xpose.msra.mxu3 %v615_v58  ;;  %631 = vmatpush.bf16.xpose.msra.mxu1 %v564_v0  ;;  %v213_v58 = vpack.c.bf16 %v152_v53, %v151_v52  ;;  %v184_v0 = vld [vmem:[%s1983_s1 + $0x128] sm:$0xff] }
  0xe0   :  { %1171 = vmatmul.msk.bf16.vlgmr.msrb.gmra.mxu3 %vm425_vm3, %v418_v9  ;;  %v579_v60 = vsel %vm517_vm1, %v230_v56, 0  ;;  %v552_v2 = vsel %vm517_vm1, %v221_v59, 0  ;;  %v229_v9 = vpack.c.bf16 %v184_v0, %v183_v63  ;;  %1002 = vperm.xlu1 %1222, %v784_v55  }
  0xe1   :  { %v528_v62 = vsel %vm517_vm1, %v213_v58, 0 }
  0xe6   :  { %644 = vmatpush.bf16.xpose.msra.mxu2 %v588_v11  ;;  %619 = vmatpush.bf16.xpose.msra.mxu0 %v537_v13  ;;  %v212_v11 = vpack.c.bf16 %v150_v5, %v149_v4  ;;  %v576_v13 = vsel %vm517_vm1, %v229_v9, 0 }
  0xe7   :  { %657 = vmatpush.bf16.xpose.msra.mxu3 %v612_v12  ;;  %632 = vmatpush.bf16.xpose.msra.mxu1 %v561_v17  ;;  %v220_v12 = vpack.c.bf16 %v166_v7, %v165_v6  ;;  %v182_v17 = vld [vmem:[%s1983_s1 + $0x118] sm:$0xff] }
  0xe8   :  { %v525_v15 = vsel %vm517_vm1, %v212_v11, 0  ;;  %v228_v25 = vpack.c.bf16 %v182_v17, %v181_v16 }
  0xe9   :  { %v549_v19 = vsel %vm517_vm1, %v220_v12, 0 }
  0xee   :  { %645 = vmatpush.bf16.xpose.msra.mxu2 %v585_v27  ;;  %620 = vmatpush.bf16.xpose.msra.mxu0 %v534_v29  ;;  %v211_v27 = vpack.c.bf16 %v148_v22, %v147_v21  ;;  %v573_v29 = vsel %vm517_vm1, %v228_v25, 0  ;;  %v690_v21 = vpop.permute.xlu1 %689 }
  0xef   :  { %658 = vmatpush.bf16.xpose.msra.mxu3 %v609_v28  ;;  %633 = vmatpush.bf16.xpose.msra.mxu1 %v558_v33  ;;  %v219_v28 = vpack.c.bf16 %v164_v24, %v163_v23  ;;  %v180_v33 = vld [vmem:[%s1983_s1 + $0x108] sm:$0xff] }
  0xf0   :  { %v522_v31 = vsel %vm517_vm1, %v211_v27, 0  ;;  %v227_v37 = vpack.c.bf16 %v180_v33, %v179_v32 }
  0xf1   :  { %v546_v34 = vsel %vm517_vm1, %v219_v28, 0 }
  0xf2   :  { %v570_v39 = vsel %vm517_vm1, %v227_v37, 0 }
  0xf6   :  { %646 = vmatpush.bf16.xpose.msra.mxu2 %v582_v44  ;;  %621 = vmatpush.bf16.xpose.msra.mxu0 %v531_v46 }
  0xf7   :  { %659 = vmatpush.bf16.xpose.msra.mxu3 %v606_v45  ;;  %634 = vmatpush.bf16.xpose.msra.mxu1 %v555_v50  ;;  %v515_v50 = vpop.permute.xlu0 %514 }
  0xfe   :  { %647 = vmatpush.bf16.xpose.msra.mxu2 %v579_v60  ;;  %622 = vmatpush.bf16.xpose.msra.mxu0 %v528_v62 }
  0xff   :  { %660 = vmatpush.bf16.xpose.msra.mxu3 %v603_v61  ;;  %635 = vmatpush.bf16.xpose.msra.mxu1 %v552_v2 }
 0x106   :  { %648 = vmatpush.bf16.xpose.msra.mxu2 %v576_v13  ;;  %623 = vmatpush.bf16.xpose.msra.mxu0 %v525_v15 }
 0x107   :  { %661 = vmatpush.bf16.xpose.msra.mxu3 %v600_v14  ;;  %636 = vmatpush.bf16.xpose.msra.mxu1 %v549_v19 }
 0x10e   :  { %649 = vmatpush.bf16.xpose.msra.mxu2 %v573_v29  ;;  %624 = vmatpush.bf16.xpose.msra.mxu0 %v522_v31 }
 0x10f   :  { %662 = vmatpush.bf16.xpose.msra.mxu3 %v597_v30  ;;  %637 = vmatpush.bf16.xpose.msra.mxu1 %v546_v34 }
 0x115   :  { %1172 = vmatmul.msk.bf16.vlgmr.msra.gmra.mxu0 %vm517_vm1, %v510_v40 }
 0x116   :  { %650 = vmatpush.bf16.xpose.msra.mxu2 %v570_v39  ;;  %1173 = vmatmul.msk.bf16.vlgmr.msra.gmra.mxu1 %vm517_vm1, %v510_v40 }
 0x117   :  { %663 = vmatpush.bf16.xpose.msra.mxu3 %v594_v41 }
 0x11d   :  { %1174 = vmatmul.msk.bf16.vlgmr.msra.gmra.mxu2 %vm517_vm1, %v510_v40 }
 0x11e   :  { %1175 = vmatmul.msk.bf16.vlgmr.msra.gmra.mxu3 %vm517_vm1, %v510_v40 }
 0x13c   :  { %v423_v22 = vpop.permute.xlu1 %422 }
 0x152   :  { %v451_v42 = vpop.f32.mrf.mxu0 }
 0x153   :  { %v464_v43 = vpop.f32.mrf.mxu1  ;;  %v452_v23 = vadd.f32 %v451_v42, %v423_v22 }
 0x154   :  { %v465_v24 = vadd.f32 %v464_v43, %v423_v22 }
 0x155   :  { %v494_v25 = vpack.c.bf16 %v452_v23, %v452_v23 }
 0x156   :  { %v495_v26 = vpack.c.bf16 %v465_v24, %v465_v24 }
 0x157   :  { %v498_v27 = vunpack.c.l.bf16 %v494_v25 }
 0x158   :  { %v499_v29 = vunpack.c.l.bf16 %v495_v26 }
 0x15a   :  { %v453_v46 = vpop.f32.mrf.mxu0 }
 0x15b   :  { %v466_v47 = vpop.f32.mrf.mxu1 }
 0x160   :  { %v1857_v44 = vpop.f32.mrf.mxu2 }
 0x161   :  { %v478_v41 = vadd.f32 %v1857_v44, %v423_v22 }
 0x163   :  { %v1859_v45 = vpop.f32.mrf.mxu3 }
 0x164   :  { %v491_v42 = vadd.f32 %v1859_v45, %v423_v22 }
 0x168   :  { %v479_v48 = vpop.f32.mrf.mxu2 }
 0x16b   :  { %v492_v49 = vpop.f32.mrf.mxu3 }
 0x192   :  { %v626_v51 = vpop.f32.mrf.mxu0 }
 0x193   :  { %v627_v52 = vadd.f32 %v626_v51, %v515_v50  ;;  %v639_v53 = vpop.f32.mrf.mxu1 }
 0x194   :  { %v640_v54 = vadd.f32 %v639_v53, %v515_v50 }
 0x195   :  { %v669_v56 = vpack.c.bf16 %v627_v52, %v627_v52  ;;  %v497_v52 = vpack.c.bf16 %v491_v42, %v491_v42 }
 0x196   :  { %v670_v57 = vpack.c.bf16 %v640_v54, %v640_v54  ;;  %v1218_v54 = vld [vmem:[%s1989_s11] sm:$0xff] }
 0x197   :  { %v673_v58 = vunpack.c.l.bf16 %v669_v56 }
 0x198   :  { %v674_v59 = vunpack.c.l.bf16 %v670_v57 }
 0x199   :  { %1232 = vtanh.f32 %v673_v58  ;;  %v501_v58 = vunpack.c.l.bf16 %v497_v52 }
 0x19a   :  { %1234 = vtanh.f32 %v674_v59  ;;  %v628_v60 = vpop.f32.mrf.mxu0 }
 0x19b   :  { %v641_v61 = vpop.f32.mrf.mxu1 }
 0x19f   :  { %v1233_v62 = vpop.eup %1232 }
 0x1a0   :  { %v652_v63 = vpop.f32.mrf.mxu2  ;;  %v1235_v0 = vpop.eup %1234  ;;  %v681_v1 = vpack.c.bf16 %v1233_v62, %v1233_v62 }
 0x1a1   :  { %v653_v2 = vadd.f32 %v652_v63, %v515_v50  ;;  %v665_v3 = vpop.f32.mrf.mxu3  ;;  %v682_v4 = vpack.c.bf16 %v1235_v0, %v1235_v0 }
 0x1a2   :  { %v666_v5 = vadd.f32 %v665_v3, %v515_v50  ;;  %v696_v7 = vsel %vm429_vm2, %v681_v1, 0  ;;  %v496_v50 = vpack.c.bf16 %v478_v41, %v478_v41 }
 0x1a3   :  { %v671_v6 = vpack.c.bf16 %v653_v2, %v653_v2  ;;  %714 = vmatpush.bf16.msrb.mxu0 %v696_v7  ;;  %v699_v9 = vsel %vm429_vm2, %v682_v4, 0  ;;  %v1219_v7 = vld [vmem:[%s1989_s11 + $0x8] sm:$0xff] }
 0x1a4   :  { %v672_v8 = vpack.c.bf16 %v666_v5, %v666_v5  ;;  %727 = vmatpush.bf16.msrb.mxu1 %v699_v9  ;;  %v500_v56 = vunpack.c.l.bf16 %v496_v50 }
 0x1a5   :  { %v675_v11 = vunpack.c.l.bf16 %v671_v6 }
 0x1a6   :  { %v676_v12 = vunpack.c.l.bf16 %v672_v8  ;;  %1176 = vmatmul.msk.bf16.vlgmr.msrb.gmra.mxu0 %vm425_vm3, %v685_v10 }
 0x1a7   :  { %1236 = vtanh.f32 %v675_v11  ;;  %1177 = vmatmul.msk.bf16.vlgmr.msrb.gmra.mxu1 %vm425_vm3, %v685_v10 }
 0x1a8   :  { %1238 = vtanh.f32 %v676_v12  ;;  %v654_v13 = vpop.f32.mrf.mxu2 }
 0x1a9   :  { %v667_v14 = vpop.f32.mrf.mxu3  ;;  %1240 = vtanh.f32 %v498_v27 }
 0x1aa   :  { %1242 = vtanh.f32 %v499_v29 }
 0x1ad   :  { %v1237_v15 = vpop.eup %1236 }
 0x1ae   :  { %v1239_v16 = vpop.eup %1238  ;;  %v683_v17 = vpack.c.bf16 %v1237_v15, %v1237_v15 }
 0x1af   :  { %v684_v18 = vpack.c.bf16 %v1239_v16, %v1239_v16  ;;  %v1241_v39 = vpop.eup %1240 }
 0x1b0   :  { %v702_v19 = vsel %vm429_vm2, %v683_v17, 0  ;;  %v1243_v40 = vpop.eup %1242  ;;  %v506_v46 = vpack.c.bf16 %v1241_v39, %v1241_v39  ;;  %v1216_v17 = vld [vmem:[%s1990_s10] sm:$0xff] }
 0x1b1   :  { %740 = vmatpush.bf16.msrb.mxu2 %v702_v19  ;;  %v705_v20 = vsel %vm429_vm2, %v684_v18, 0  ;;  %v507_v49 = vpack.c.bf16 %v1243_v40, %v1243_v40  ;;  %v785_v18 = vld [vmem:[%s1981_s12 + $0x10] sm:$0xff]  ;;  %v786_v19 = vld [vmem:[%s1981_s12 + $0x18] sm:$0xff] }
 0x1b2   :  { %753 = vmatpush.bf16.msrb.mxu3 %v705_v20  ;;  %v908_v44 = vsel %vm429_vm2, %v506_v46, 0  ;;  %1007 = vperm.xlu2 %1223, %v785_v18   ;;  %v1217_v20 = vld [vmem:[%s1990_s10 + $0x8] sm:$0xff] }
 0x1b3   :  { %v911_v45 = vsel %vm429_vm2, %v507_v49, 0 }
 0x1b4   :  { %1178 = vmatmul.msk.bf16.vlgmr.msrb.gmra.mxu2 %vm425_vm3, %v685_v10 }
 0x1b5   :  { %1179 = vmatmul.msk.bf16.vlgmr.msrb.gmra.mxu3 %vm425_vm3, %v685_v10 }
 0x1ba   :  { %1012 = vperm.xlu2 %1223, %v786_v19  }
 0x20c   :  { %v1932_v40 = vpop.permute.xlu2 %1007 }
 0x223   :  { %v716_v28 = vpop.f32.mrf.mxu0 }
 0x224   :  { %v717_v30 = vadd.f32 %v716_v28, %v690_v21  ;;  %v729_v31 = vpop.f32.mrf.mxu1 }
 0x225   :  { %v730_v32 = vadd.f32 %v729_v31, %v690_v21 }
 0x226   :  { %v759_v33 = vpack.c.bf16 %v717_v30, %v717_v30 }
 0x227   :  { %v760_v34 = vpack.c.bf16 %v730_v32, %v730_v32 }
 0x228   :  { %v763_v35 = vunpack.c.l.bf16 %v759_v33 }
 0x229   :  { %v764_v36 = vunpack.c.l.bf16 %v760_v34 }
 0x22a   :  { %1244 = vtanh.f32 %v763_v35 }
 0x22b   :  { %1246 = vtanh.f32 %v764_v36  ;;  %v718_v37 = vpop.f32.mrf.mxu0 }
 0x22c   :  { %v731_v38 = vpop.f32.mrf.mxu1  ;;  %1248 = vtanh.f32 %v500_v56 }
 0x22d   :  { %1250 = vtanh.f32 %v501_v58 }
 0x230   :  { %v1245_v43 = vpop.eup %1244 }
 0x231   :  { %v1247_v47 = vpop.eup %1246  ;;  %v771_v48 = vpack.c.bf16 %v1245_v43, %v1245_v43 }
 0x232   :  { %v772_v51 = vpack.c.bf16 %v1247_v47, %v1247_v47  ;;  %v1249_v4 = vpop.eup %1248 }
 0x233   :  { %v804_v53 = vsel %vm429_vm2, %v771_v48, 0  ;;  %v1251_v5 = vpop.eup %1250  ;;  %v508_v10 = vpack.c.bf16 %v1249_v4, %v1249_v4  ;;  %v1936_v48 = vpop.permute.xlu1 %1002 }
 0x234   :  { %822 = vmatpush.bf16.msra.mxu0 %v804_v53  ;;  %v807_v55 = vsel %vm429_vm2, %v772_v51, 0  ;;  %v509_v11 = vpack.c.bf16 %v1251_v5, %v1251_v5  ;;  %v1941_v51 = vpop.permute.xlu0 %997 }
 0x235   :  { %841 = vmatpush.bf16.msra.mxu1 %v807_v55  ;;  %v914_v15 = vsel %vm429_vm2, %v508_v10, 0 }
 0x236   :  { %v917_v16 = vsel %vm429_vm2, %v509_v11, 0 }
 0x237   :  { %v742_v57 = vpop.f32.mrf.mxu2  ;;  %1188 = vmatmul.msk.bf16.vlgmr.msra.gmra.mxu0 %vm425_vm3, %v1218_v54 }
 0x238   :  { %926 = vmatpush.bf16.msrb.mxu0 %v908_v44  ;;  %v743_v59 = vadd.f32 %v742_v57, %v690_v21  ;;  %v755_v60 = vpop.f32.mrf.mxu3  ;;  %1190 = vmatmul.msk.bf16.vlgmr.msra.gmra.mxu1 %vm425_vm3, %v1218_v54  ;;  %v1944_v57 = vpop.permute.xlu2 %1012 }
 0x239   :  { %945 = vmatpush.bf16.msrb.mxu1 %v911_v45  ;;  %v756_v61 = vadd.f32 %v755_v60, %v690_v21  ;;  %v1080_v21 = vld [vmem:[%s1991_s14] sm:$0xf] }
 0x23a   :  { %v761_v62 = vpack.c.bf16 %v743_v59, %v743_v59  ;;  %1083 = vperm.xlu2 %1223, %v1080_v21  }
 0x23b   :  { %v762_v63 = vpack.c.bf16 %v756_v61, %v756_v61 }
 0x23c   :  { %v765_v0 = vunpack.c.l.bf16 %v761_v62 }
 0x23d   :  { %v766_v1 = vunpack.c.l.bf16 %v762_v63 }
 0x23e   :  { %1252 = vtanh.f32 %v765_v0 }
 0x23f   :  { %1254 = vtanh.f32 %v766_v1  ;;  %v744_v2 = vpop.f32.mrf.mxu2 }
 0x240   :  { %v757_v3 = vpop.f32.mrf.mxu3 }
 0x244   :  { %v1253_v6 = vpop.eup %1252 }
 0x245   :  { %v1255_v8 = vpop.eup %1254  ;;  %v773_v9 = vpack.c.bf16 %v1253_v6, %v1253_v6 }
 0x246   :  { %v774_v12 = vpack.c.bf16 %v1255_v8, %v1255_v8 }
 0x247   :  { %v810_v13 = vsel %vm429_vm2, %v773_v9, 0  ;;  %1189 = vmatmul.msk.bf16.gmra.mxu0 %vm425_vm3, %v1219_v7 }
 0x248   :  { %860 = vmatpush.bf16.msra.mxu2 %v810_v13  ;;  %v813_v14 = vsel %vm429_vm2, %v774_v12, 0  ;;  %1191 = vmatmul.msk.bf16.gmra.mxu1 %vm425_vm3, %v1219_v7 }
 0x249   :  { %879 = vmatpush.bf16.msra.mxu3 %v813_v14 }
 0x24b   :  { %1192 = vmatmul.msk.bf16.vlgmr.msra.gmra.mxu2 %vm425_vm3, %v1218_v54 }
 0x24c   :  { %964 = vmatpush.bf16.msrb.mxu2 %v914_v15  ;;  %1194 = vmatmul.msk.bf16.vlgmr.msra.gmra.mxu3 %vm425_vm3, %v1218_v54 }
 0x24d   :  { %983 = vmatpush.bf16.msrb.mxu3 %v917_v16 }
 0x257   :  { %1204 = vmatmul.msk.bf16.vlgmr.msrb.gmra.mxu0 %vm425_vm3, %v1216_v17 }
 0x258   :  { %1206 = vmatmul.msk.bf16.vlgmr.msrb.gmra.mxu1 %vm425_vm3, %v1216_v17 }
 0x25b   :  { %1193 = vmatmul.msk.bf16.gmra.mxu2 %vm425_vm3, %v1219_v7 }
 0x25c   :  { %1195 = vmatmul.msk.bf16.gmra.mxu3 %vm425_vm3, %v1219_v7 }
 0x267   :  { %1205 = vmatmul.msk.bf16.gmra.mxu0 %vm425_vm3, %v1217_v20 }
 0x268   :  { %1207 = vmatmul.msk.bf16.gmra.mxu1 %vm425_vm3, %v1217_v20 }
 0x26b   :  { %1208 = vmatmul.msk.bf16.vlgmr.msrb.gmra.mxu2 %vm425_vm3, %v1216_v17 }
 0x26c   :  { %1210 = vmatmul.msk.bf16.vlgmr.msrb.gmra.mxu3 %vm425_vm3, %v1216_v17 }
 0x27b   :  { %1209 = vmatmul.msk.bf16.gmra.mxu2 %vm425_vm3, %v1217_v20 }
 0x27c   :  { %1211 = vmatmul.msk.bf16.gmra.mxu3 %vm425_vm3, %v1217_v20 }
 0x2b4   :  { %v824_v22 = vpop.f32.mrf.mxu0 }
 0x2b5   :  { %v843_v23 = vpop.f32.mrf.mxu1 }
 0x2bc   :  { %v826_v24 = vpop.f32.mrf.mxu0 }
 0x2bd   :  { %v845_v25 = vpop.f32.mrf.mxu1 }
 0x2c4   :  { %v829_v26 = vpop.f32.mrf.mxu0 }
 0x2c5   :  { %v848_v27 = vpop.f32.mrf.mxu1 }
 0x2cc   :  { %v831_v28 = vpop.f32.mrf.mxu0 }
 0x2cd   :  { %v850_v29 = vpop.f32.mrf.mxu1 }
 0x2ce   :  { %v1922_v30 = vpop.f32.mrf.mxu2 }
 0x2cf   :  { %v1924_v31 = vpop.f32.mrf.mxu3 }
 0x2d4   :  { %v928_v32 = vpop.f32.mrf.mxu0 }
 0x2d5   :  { %v947_v34 = vpop.f32.mrf.mxu1  ;;  %v929_v43 = vadd.f32 %v928_v32, %v824_v22 }
 0x2d6   :  { %v864_v33 = vpop.f32.mrf.mxu2  ;;  %v948_v54 = vadd.f32 %v947_v34, %v843_v23 }
 0x2d7   :  { %v1926_v35 = vpop.f32.mrf.mxu3  ;;  %v1015_v52 = vadd.f32 %v1941_v51, %v929_v43 }
 0x2d8   :  { %v1016_v0 = vadd.f32 %v1941_v51, %v948_v54 }
 0x2dc   :  { %v930_v36 = vpop.f32.mrf.mxu0 }
 0x2dd   :  { %v949_v38 = vpop.f32.mrf.mxu1  ;;  %v931_v41 = vadd.f32 %v930_v36, %v826_v24 }
 0x2de   :  { %v1928_v37 = vpop.f32.mrf.mxu2  ;;  %v950_v53 = vadd.f32 %v949_v38, %v845_v25 }
 0x2df   :  { %v1930_v39 = vpop.f32.mrf.mxu3  ;;  %v1019_v50 = vadd.f32 %v1936_v48, %v931_v41 }
 0x2e0   :  { %v1020_v58 = vadd.f32 %v1936_v48, %v950_v53 }
 0x2e1   :  { %v1031_v55 = vpack.c.bf16 %v1019_v50, %v1015_v52  ;;  %v1079_v50 = vld [vmem:[%s1992_s13] sm:$0x3] }
 0x2e2   :  { %v1032_v7 = vpack.c.bf16 %v1020_v58, %v1016_v0 }
 0x2e3   :  { %v1039_v1 = vunpack.c.l.bf16 %v1031_v55  ;;  %v1043_v4 = vunpack.c.h.bf16 %v1031_v55 }
 0x2e4   :  { %v933_v42 = vpop.f32.mrf.mxu0  ;;  %v1040_v14 = vunpack.c.l.bf16 %v1032_v7  ;;  %v1044_v16 = vunpack.c.h.bf16 %v1032_v7 }
 0x2e5   :  { %v952_v47 = vpop.f32.mrf.mxu1  ;;  %v934_v44 = vadd.f32 %v933_v42, %v829_v26  ;;  %1256 = vtanh.f32 %v1039_v1 }
 0x2e6   :  { %v1934_v46 = vpop.f32.mrf.mxu2  ;;  %v953_v45 = vadd.f32 %v952_v47, %v848_v27  ;;  %1258 = vtanh.f32 %v1043_v4 }
 0x2e7   :  { %v1938_v49 = vpop.f32.mrf.mxu3  ;;  %v1023_v2 = vadd.f32 %v1932_v40, %v934_v44 }
 0x2e8   :  { %v1024_v5 = vadd.f32 %v1932_v40, %v953_v45 }
 0x2eb   :  { %v1257_v18 = vpop.eup %1256 }
 0x2ec   :  { %v935_v56 = vpop.f32.mrf.mxu0  ;;  %v1259_v19 = vpop.eup %1258 }
 0x2ed   :  { %v936_v59 = vadd.f32 %v935_v56, %v831_v28  ;;  %v954_v60 = vpop.f32.mrf.mxu1  ;;  %v1071_v42 = vpack.c.bf16 %v1259_v19, %v1257_v18 }
 0x2ee   :  { %v966_v61 = vpop.f32.mrf.mxu2  ;;  %v955_v62 = vadd.f32 %v954_v60, %v850_v29 }
 0x2ef   :  { %v985_v63 = vpop.f32.mrf.mxu3  ;;  %v1027_v3 = vadd.f32 %v1944_v57, %v936_v59  ;;  %v967_v26 = vadd.f32 %v966_v61, %v1922_v30 }
 0x2f0   :  { %v1028_v6 = vadd.f32 %v1944_v57, %v955_v62  ;;  %v986_v43 = vadd.f32 %v985_v63, %v1924_v31 }
 0x2f1   :  { %v1035_v8 = vpack.c.bf16 %v1027_v3, %v1023_v2  ;;  %v1017_v38 = vadd.f32 %v1941_v51, %v967_v26 }
 0x2f2   :  { %v1036_v9 = vpack.c.bf16 %v1028_v6, %v1024_v5 }
 0x2f3   :  { %v1047_v10 = vunpack.c.l.bf16 %v1035_v8  ;;  %v1051_v11 = vunpack.c.h.bf16 %v1035_v8 }
 0x2f4   :  { %v1048_v12 = vunpack.c.l.bf16 %v1036_v9  ;;  %v1052_v13 = vunpack.c.h.bf16 %v1036_v9 }
 0x2f5   :  { %1260 = vtanh.f32 %v1047_v10 }
 0x2f6   :  { %v968_v15 = vpop.f32.mrf.mxu2  ;;  %1262 = vtanh.f32 %v1048_v12 }
 0x2f7   :  { %v987_v17 = vpop.f32.mrf.mxu3  ;;  %1264 = vtanh.f32 %v1051_v11  ;;  %v969_v22 = vadd.f32 %v968_v15, %v864_v33  ;;  %v1084_v15 = vpop.permute.xlu2 %1083 }
 0x2f8   :  { %1266 = vtanh.f32 %v1052_v13  ;;  %v988_v41 = vadd.f32 %v987_v17, %v1926_v35 }
 0x2f9   :  { %1268 = vtanh.f32 %v1040_v14  ;;  %v1021_v36 = vadd.f32 %v1936_v48, %v969_v22 }
 0x2fa   :  { %1270 = vtanh.f32 %v1044_v16  ;;  %v1022_v54 = vadd.f32 %v1936_v48, %v988_v41 }
 0x2fb   :  { %v1261_v20 = vpop.eup %1260  ;;  %v1033_v47 = vpack.c.bf16 %v1021_v36, %v1017_v38 }
 0x2fc   :  { %v1263_v21 = vpop.eup %1262 }
 0x2fd   :  { %v1265_v23 = vpop.eup %1264  ;;  %v1041_v44 = vunpack.c.l.bf16 %v1033_v47 }
 0x2fe   :  { %v971_v24 = vpop.f32.mrf.mxu2  ;;  %v1267_v25 = vpop.eup %1266  ;;  %v1075_v28 = vpack.c.bf16 %v1265_v23, %v1261_v20 }
 0x2ff   :  { %v990_v27 = vpop.f32.mrf.mxu3  ;;  %v1269_v29 = vpop.eup %1268  ;;  %v1076_v32 = vpack.c.bf16 %v1267_v25, %v1263_v21  ;;  %v972_v30 = vadd.f32 %v971_v24, %v1928_v37  ;;  %v1018_v37 = vadd.f32 %v1941_v51, %v986_v43  ;;  %1272 = vtanh.f32 %v1041_v44 }
 0x300   :  { %v1271_v34 = vpop.eup %1270  ;;  %1096 = vmatpush.bf16.msra.mxu0 %v1075_v28  ;;  %v991_v52 = vadd.f32 %v990_v27, %v1930_v39  ;;  %v1045_v39 = vunpack.c.h.bf16 %v1033_v47 }
 0x301   :  { %1109 = vmatpush.bf16.msra.mxu1 %v1076_v32  ;;  %v1072_v33 = vpack.c.bf16 %v1271_v34, %v1269_v29  ;;  %v1025_v45 = vadd.f32 %v1932_v40, %v972_v30 }
 0x302   :  { %v1026_v58 = vadd.f32 %v1932_v40, %v991_v52  ;;  %1274 = vtanh.f32 %v1045_v39 }
 0x304   :  { %1097 = vmatpush.bf16.msra.mxu0 %v1071_v42 }
 0x305   :  { %1110 = vmatpush.bf16.msra.mxu1 %v1072_v33  ;;  %v1273_v1 = vpop.eup %1272 }
 0x306   :  { %v973_v53 = vpop.f32.mrf.mxu2 }
 0x307   :  { %v974_v35 = vadd.f32 %v973_v53, %v1934_v46  ;;  %v992_v55 = vpop.f32.mrf.mxu3  ;;  %1212 = vmatmul.msk.bf16.vlgmr.msra.gmra.mxu0 %vm1086_vm4, %v1079_v50  ;;  %v1034_v46 = vpack.c.bf16 %v1022_v54, %v1018_v37 }
 0x308   :  { %v993_v31 = vadd.f32 %v992_v55, %v1938_v49  ;;  %1213 = vmatmul.msk.bf16.vlgmr.msra.gmra.mxu1 %vm1086_vm4, %v1079_v50  ;;  %v1275_v40 = vpop.eup %1274 }
 0x309   :  { %v1029_v56 = vadd.f32 %v1944_v57, %v974_v35  ;;  %v1042_v63 = vunpack.c.l.bf16 %v1034_v46  ;;  %v1046_v0 = vunpack.c.h.bf16 %v1034_v46  ;;  %v1073_v9 = vpack.c.bf16 %v1275_v40, %v1273_v1 }
 0x30a   :  { %v1030_v48 = vadd.f32 %v1944_v57, %v993_v31 }
 0x30b   :  { %v1037_v59 = vpack.c.bf16 %v1029_v56, %v1025_v45 }
 0x30c   :  { %v1038_v60 = vpack.c.bf16 %v1030_v48, %v1026_v58 }
 0x30d   :  { %v1049_v49 = vunpack.c.l.bf16 %v1037_v59  ;;  %v1053_v61 = vunpack.c.h.bf16 %v1037_v59 }
 0x30e   :  { %v1050_v51 = vunpack.c.l.bf16 %v1038_v60  ;;  %v1054_v62 = vunpack.c.h.bf16 %v1038_v60 }
 0x30f   :  { %1276 = vtanh.f32 %v1049_v49 }
 0x310   :  { %1278 = vtanh.f32 %v1053_v61 }
 0x311   :  { %1280 = vtanh.f32 %v1050_v51 }
 0x312   :  { %1282 = vtanh.f32 %v1054_v62 }
 0x313   :  { %1284 = vtanh.f32 %v1042_v63 }
 0x314   :  { %1286 = vtanh.f32 %v1046_v0 }
 0x315   :  { %v1277_v57 = vpop.eup %1276 }
 0x316   :  { %v1279_v2 = vpop.eup %1278 }
 0x317   :  { %v1281_v3 = vpop.eup %1280  ;;  %v1077_v4 = vpack.c.bf16 %v1279_v2, %v1277_v57 }
 0x318   :  { %v1283_v5 = vpop.eup %1282 }
 0x319   :  { %v1285_v6 = vpop.eup %1284  ;;  %1122 = vmatpush.bf16.msra.mxu2 %v1077_v4  ;;  %v1078_v7 = vpack.c.bf16 %v1283_v5, %v1281_v3 }
 0x31a   :  { %v1287_v8 = vpop.eup %1286 }
 0x31b   :  { %1135 = vmatpush.bf16.msra.mxu3 %v1078_v7  ;;  %v1074_v10 = vpack.c.bf16 %v1287_v8, %v1285_v6 }
 0x31d   :  { %1123 = vmatpush.bf16.msra.mxu2 %v1073_v9 }
 0x31f   :  { %1136 = vmatpush.bf16.msra.mxu3 %v1074_v10 }
 0x320   :  { %1214 = vmatmul.msk.bf16.vlgmr.msra.gmra.mxu2 %vm1086_vm4, %v1079_v50 }
 0x322   :  { %1215 = vmatmul.msk.bf16.vlgmr.msra.gmra.mxu3 %vm1086_vm4, %v1079_v50 }
 0x384   :  { %v1099_v11 = vpop.f32.mrf.mxu0 }
 0x385   :  { %v1112_v12 = vpop.f32.mrf.mxu1  ;;  %v1100_v16 = vadd.f32 %v1099_v11, %v1084_v15 }
 0x386   :  { %v1113_v17 = vadd.f32 %v1112_v12, %v1084_v15 }
 0x388   :  { %v1142_v19 = vpack.c.bf16 %v1113_v17, %v1100_v16 }
 0x38a   :  { %v1146_v23 = vrot.slane %v1142_v19, 2 }
 0x38c   :  { %v1101_v13 = vpop.f32.mrf.mxu0  ;;  %v1152_v28 = vsel %vm1149_vm5, %v1142_v19, %v1146_v23 }
 0x38d   :  { %v1114_v14 = vpop.f32.mrf.mxu1 }
 0x3a3   :  { %v1125_v18 = vpop.f32.mrf.mxu2 }
 0x3a4   :  { %v1126_v20 = vadd.f32 %v1125_v18, %v1084_v15 }
 0x3a5   :  { %v1138_v21 = vpop.f32.mrf.mxu3 }
 0x3a6   :  { %v1139_v22 = vadd.f32 %v1138_v21, %v1084_v15 }
 0x3a8   :  { %v1143_v24 = vpack.c.bf16 %v1139_v22, %v1126_v20 }
 0x3aa   :  { %v1147_v25 = vrot.slane %v1143_v24, 4  ;;  %v1148_v26 = vrot.slane %v1143_v24, 6 }
 0x3ab   :  { %v1127_v27 = vpop.f32.mrf.mxu2 }
 0x3ac   :  { %v1156_v29 = vsel %vm1153_vm6, %v1147_v25, %v1148_v26 }
 0x3ad   :  { %v1157_v32 = vsel %vm429_vm2, %v1152_v28, %v1156_v29  ;;  %v1140_v34 = vpop.f32.mrf.mxu3 }
 0x3ae   :  { %1159 = vst [vmem:[%s1993_s15] sm:$0xff] %v1157_v32 }

</bundles_post_ra>
